<compile_context>
chip_gen: v6e
topology: v6e:2x2x1
jax: 0.10.0
libtpu: 0.0.40
codegen_flags: <defaults>
</compile_context>

<pallas_src>
import jax
import jax.numpy as jnp
from jax import lax
from jax.experimental import pallas as pl
from jax.experimental.pallas import tpu as pltpu


# -----------------------------------------------------------------------------
# Shared helpers
# -----------------------------------------------------------------------------

def _fc_branch(v, w1, b1, w2, b2):
    """sigmoid(relu(v @ w1 + b1) @ w2 + b2), accumulating in f32 on the MXU."""
    h = jnp.dot(v, w1.astype(jnp.float32), preferred_element_type=jnp.float32) + b1
    h = jnp.maximum(h, 0.0)
    o = jnp.dot(h, w2.astype(jnp.float32), preferred_element_type=jnp.float32) + b2
    return jax.nn.sigmoid(o)


def _vmem_budget_bytes():
    """Generation-aware VMEM budget (leave ~15% headroom for compiler scratch)."""
    try:
        cap = int(pltpu.get_tpu_info().vmem_capacity_bytes)
    except Exception:
        cap = 64 << 20  # conservative: v7x per-TensorCore physical VMEM
    return int(cap * 0.85)


def _param_spec(shape, idx_map, single_buffer):
    # Grid-invariant FC params: DMA'd once, stay resident in VMEM.
    if single_buffer:
        return pl.BlockSpec(shape, idx_map, pipeline_mode=pl.Buffered(1))
    return pl.BlockSpec(shape, idx_map)


# -----------------------------------------------------------------------------
# Single-pass kernel (slab fits VMEM): pool + FC + scale in one grid step.
# -----------------------------------------------------------------------------

def _make_single_pass_kernel(inv_hw):
    def kernel(x_ref, w1m, b1m, w2m, b2m, w1a, b1a, w2a, b2a, o_ref):
        x = x_ref[...]                                        # (Bt, C, HW)

        # Both reductions read the same VMEM-resident slab; mean via sum*(1/HW).
        # Max is exact in the input dtype; only the mean-sum accumulates in f32.
        max_in = jnp.max(x, axis=-1).astype(jnp.float32)      # (Bt, C)
        avg_in = jnp.sum(x.astype(jnp.float32), axis=-1) * inv_hw

        mw = _fc_branch(max_in, w1m[...], b1m[...], w2m[...], b2m[...])
        aw = _fc_branch(avg_in, w1a[...], b1a[...], w2a[...], b2a[...])
        weight = jax.nn.sigmoid(mw + aw)                      # (Bt, C) f32

        # Big elementwise pass in the input dtype (bf16 VALU on v6e/v7x).
        o_ref[...] = (x * weight.astype(x.dtype)[:, :, None]).astype(o_ref.dtype)

    return kernel


# -----------------------------------------------------------------------------
# Two-phase fallback (slab too large for VMEM): spatially-tiled reduce + scale.
# -----------------------------------------------------------------------------

def _make_reduce_fc_kernel(hw_total, hwt, inv_hw, need_mask):
    def kernel(x_ref, w1m, b1m, w2m, b2m, w1a, b1a, w2a, b2a,
               weight_ref, max_acc, sum_acc):
        s = pl.program_id(1)  # spatial tile index (reduction axis, last in grid)

        @pl.when(s == 0)
        def _():
            max_acc[...] = jnp.full(max_acc.shape, -jnp.inf, max_acc.dtype)
            sum_acc[...] = jnp.zeros(sum_acc.shape, sum_acc.dtype)

        x = x_ref[...]                                        # (1, C, HWt)
        if need_mask:
            idx = s * hwt + lax.broadcasted_iota(jnp.int32, x.shape, 2)
            valid = idx < hw_total
            x_max = jnp.where(valid, x, jnp.asarray(-jnp.inf, x.dtype))
            x_sum = jnp.where(valid, x.astype(jnp.float32), 0.0)
        else:
            x_max = x
            x_sum = x.astype(jnp.float32)

        max_acc[...] = jnp.maximum(max_acc[...],
                                   jnp.max(x_max, axis=-1).astype(jnp.float32))
        sum_acc[...] = sum_acc[...] + jnp.sum(x_sum, axis=-1)

        @pl.when(s == pl.num_programs(1) - 1)
        def _():
            mw = _fc_branch(max_acc[...], w1m[...], b1m[...], w2m[...], b2m[...])
            aw = _fc_branch(sum_acc[...] * inv_hw, w1a[...], b1a[...],
                            w2a[...], b2a[...])
            weight = jax.nn.sigmoid(mw + aw)                  # (1, C)
            weight_ref[...] = weight[:, :, None].astype(weight_ref.dtype)

    return kernel


def _scale_kernel(x_ref, w_ref, o_ref):
    x = x_ref[...]                                            # (1, C, HWt)
    w = w_ref[...].astype(x.dtype)                            # (1, C, 1)
    o_ref[...] = (x * w).astype(o_ref.dtype)


def _channel_attention_two_phase(x_flat, p, budget, param_bytes, *,
                                 spatial_tile=None):
    B, C, HW = x_flat.shape
    itemsize = jnp.dtype(x_flat.dtype).itemsize
    slack = 2 << 20

    if spatial_tile is None:
        hwt = (budget - param_bytes - slack) // (4 * C * itemsize)
    else:
        hwt = int(spatial_tile)
    if hwt >= HW:
        hwt = HW                              # single tile: full last dim is legal
    else:
        hwt = max(128, (hwt // 128) * 128)    # lane rule: multiple of 128
    n_s = pl.cdiv(HW, hwt)
    need_mask = (HW % hwt) != 0
    inv_hw = 1.0 / HW

    tile_bytes = C * hwt * itemsize
    vmem_limit = int(min(budget, max(4 * tile_bytes + param_bytes + slack, 16 << 20)))

    x_spec = pl.BlockSpec((1, C, hwt), lambda b, s: (b, 0, s))
    weight_spec = pl.BlockSpec((1, C, 1), lambda b, s: (b, 0, 0))

    def _run_phase1(single_buffer_params):
        param_specs = [_param_spec(a.shape, lambda b, s: (0, 0),
                                   single_buffer_params) for a in p]
        return pl.pallas_call(
            _make_reduce_fc_kernel(HW, hwt, inv_hw, need_mask),
            out_shape=jax.ShapeDtypeStruct((B, C, 1), jnp.float32),
            grid=(B, n_s),
            in_specs=[x_spec] + param_specs,
            out_specs=weight_spec,
            scratch_shapes=[pltpu.VMEM((1, C), jnp.float32),
                            pltpu.VMEM((1, C), jnp.float32)],
            compiler_params=pltpu.CompilerParams(
                dimension_semantics=("parallel", "arbitrary"),
                vmem_limit_bytes=vmem_limit),
        )(x_flat, *p)

    try:
        weight = _run_phase1(True)
    except Exception:
        # pl.Buffered(1) not supported by this build -> default double-buffering.
        weight = _run_phase1(False)

    out = pl.pallas_call(
        _scale_kernel,
        out_shape=jax.ShapeDtypeStruct((B, C, HW), x_flat.dtype),
        grid=(B, n_s),
        in_specs=[x_spec, weight_spec],
        out_specs=pl.BlockSpec((1, C, hwt), lambda b, s: (b, 0, s)),
        compiler_params=pltpu.CompilerParams(
            dimension_semantics=("parallel", "parallel"),
            vmem_limit_bytes=vmem_limit),
    )(x_flat, weight)
    return out


# -----------------------------------------------------------------------------
# Public wrapper
# -----------------------------------------------------------------------------

def channel_attention(x, params, *, force_two_phase=False, spatial_tile=None):
    """x: (B, C, H, W). params: dict of FC weights/biases (see init_params)."""
    B, C, H, W = x.shape
    HW = H * W
    x_flat = x.reshape(B, C, HW)

    p = (params["w1m"], params["b1m"], params["w2m"], params["b2m"],
         params["w1a"], params["b1a"], params["w2a"], params["b2a"])

    itemsize = jnp.dtype(x.dtype).itemsize
    slab_b = C * HW * itemsize                      # bytes per batch element
    param_bytes = sum(a.size * jnp.dtype(a.dtype).itemsize for a in p)
    # TODO(synk): optionally store the FC weights in bf16 (cast to f32 inside
    # _fc_branch) to halve the resident-parameter VMEM footprint at large C;
    # kept f32 here to match the f32 PyTorch module / reference exactly.

    budget = _vmem_budget_bytes()
    slack = 2 << 20
    resident = param_bytes + slack                  # params single-buffered

    single_pass_ok = (4 * slab_b + resident) <= budget
    if force_two_phase or not single_pass_ok:
        out = _channel_attention_two_phase(x_flat, p, budget, param_bytes,
                                           spatial_tile=spatial_tile)
        return out.reshape(B, C, H, W)

    # Batch-tile size: ~2 MiB of input per grid step, within the VMEM budget
    # (in + out double-buffered), and keep >=2 grid steps when B>=2 so the
    # "parallel" batch axis can be split across v7x's two TensorCores.
    target_step_bytes = 2 << 20
    bt = max(1, target_step_bytes // slab_b)
    bt = min(bt, max(1, (budget - resident) // (4 * slab_b)))
    if B >= 2:
        bt = min(bt, max(1, B // 2))
    bt = int(max(1, min(bt, B)))
    n_b = pl.cdiv(B, bt)
    # TODO(synk): for B == 1 on v7x, a second parallel grid axis over spatial
    # tiles (two-phase path) would keep both TensorCores busy.

    needed = 4 * bt * slab_b + param_bytes + slack
    vmem_limit = int(min(budget, max(needed, 16 << 20)))

    x_spec = pl.BlockSpec((bt, C, HW), lambda b: (b, 0, 0))
    out_spec = pl.BlockSpec((bt, C, HW), lambda b: (b, 0, 0))

    def _run(single_buffer_params):
        param_specs = [_param_spec(a.shape, lambda b: (0, 0),
                                   single_buffer_params) for a in p]
        return pl.pallas_call(
            _make_single_pass_kernel(1.0 / HW),
            out_shape=jax.ShapeDtypeStruct((B, C, HW), x.dtype),
            grid=(n_b,),
            in_specs=[x_spec] + param_specs,
            out_specs=out_spec,
            compiler_params=pltpu.CompilerParams(
                dimension_semantics=("parallel",),
                vmem_limit_bytes=vmem_limit),
        )(x_flat, *p)

    try:
        out = _run(True)
    except Exception:
        # pl.Buffered(1) not supported by this build -> default double-buffering.
        out = _run(False)
    return out.reshape(B, C, H, W)


# -----------------------------------------------------------------------------
# Params / reference / self-test
# -----------------------------------------------------------------------------

def init_params(key, in_channel, r=0.5):
    hidden = max(int(in_channel * r), 1)
    ks = jax.random.split(key, 8)

    def lin(kw, kb, fan_in, fan_out):
        bound = 1.0 / jnp.sqrt(fan_in)
        w = jax.random.uniform(kw, (fan_in, fan_out), jnp.float32, -bound, bound)
        b = jax.random.uniform(kb, (1, fan_out), jnp.float32, -bound, bound)
        return w, b

    w1m, b1m = lin(ks[0], ks[1], in_channel, hidden)
    w2m, b2m = lin(ks[2], ks[3], hidden, in_channel)
    w1a, b1a = lin(ks[4], ks[5], in_channel, hidden)
    w2a, b2a = lin(ks[6], ks[7], hidden, in_channel)
    return dict(w1m=w1m, b1m=b1m, w2m=w2m, b2m=b2m,
                w1a=w1a, b1a=b1a, w2a=w2a, b2a=b2a)


def reference(x, p):
    B, C, H, W = x.shape
    max_in = jnp.max(x.reshape(B, C, -1), axis=-1)
    avg_in = jnp.mean(x.reshape(B, C, -1), axis=-1)

    def fc(v, w1, b1, w2, b2):
        return jax.nn.sigmoid(jnp.maximum(v @ w1 + b1, 0.0) @ w2 + b2)

    mw = fc(max_in, p["w1m"], p["b1m"], p["w2m"], p["b2m"])
    aw = fc(avg_in, p["w1a"], p["b1a"], p["w2a"], p["b2a"])
    weight = jax.nn.sigmoid(mw + aw)
    return weight[:, :, None, None] * x


if __name__ == "__main__":
    key = jax.random.PRNGKey(0)
    kx, kp, kx2 = jax.random.split(key, 3)

    # Main (single-pass, batch-tiled) path.
    B, C, H, W = 2, 4, 16, 16
    x = jax.random.normal(kx, (B, C, H, W), dtype=jnp.float32)
    params = init_params(kp, C, r=0.5)

    y = jax.block_until_ready(channel_attention(x, params))
    y_ref = reference(x, params)
    assert y.shape == (B, C, H, W)
    assert jnp.allclose(y, y_ref, atol=1e-5, rtol=1e-5), "single-pass mismatch"

    # Two-phase (spatially-tiled) fallback, forced with a small tile so the
    # masked ragged-tail reduction path is exercised too (HW=144 -> 2x128 tiles).
    B2, C2, H2, W2 = 2, 4, 12, 12
    x2 = jax.random.normal(kx2, (B2, C2, H2, W2), dtype=jnp.float32)
    y2 = jax.block_until_ready(
        channel_attention(x2, params, force_two_phase=True, spatial_tile=128))
    y2_ref = reference(x2, params)
    assert y2.shape == (B2, C2, H2, W2)
    assert jnp.allclose(y2, y2_ref, atol=1e-5, rtol=1e-5), "two-phase mismatch"

    print("KERNEL_OK")
</pallas_src>

<mosaic_0001>
module attributes {stable_mosaic.version = 11 : i64} {
  func.func @kernel(%arg0: i32, %arg1: memref<1x4x256xf32, #tpu.memory_space<vmem>>, %arg2: memref<4x2xf32, #tpu.memory_space<vmem>>, %arg3: memref<1x2xf32, #tpu.memory_space<vmem>>, %arg4: memref<2x4xf32, #tpu.memory_space<vmem>>, %arg5: memref<1x4xf32, #tpu.memory_space<vmem>>, %arg6: memref<4x2xf32, #tpu.memory_space<vmem>>, %arg7: memref<1x2xf32, #tpu.memory_space<vmem>>, %arg8: memref<2x4xf32, #tpu.memory_space<vmem>>, %arg9: memref<1x4xf32, #tpu.memory_space<vmem>>, %arg10: memref<1x4x256xf32, #tpu.memory_space<vmem>>) attributes {dimension_semantics = [#tpu.dimension_semantics<parallel>], iteration_bounds = array<i64: 2>, scalar_prefetch = 0 : i64, scratch_operands = 0 : i64, tpu.core_type = #tpu.core_type<tc>, window_params = [{transform_indices = @transform_0, window_bounds = array<i64: 1, 4, 256>}, {pipeline_mode = #tpu.pipeline_mode<synchronous>, transform_indices = @transform_1, window_bounds = array<i64: 4, 2>}, {pipeline_mode = #tpu.pipeline_mode<synchronous>, transform_indices = @transform_2, window_bounds = array<i64: 1, 2>}, {pipeline_mode = #tpu.pipeline_mode<synchronous>, transform_indices = @transform_3, window_bounds = array<i64: 2, 4>}, {pipeline_mode = #tpu.pipeline_mode<synchronous>, transform_indices = @transform_4, window_bounds = array<i64: 1, 4>}, {pipeline_mode = #tpu.pipeline_mode<synchronous>, transform_indices = @transform_5, window_bounds = array<i64: 4, 2>}, {pipeline_mode = #tpu.pipeline_mode<synchronous>, transform_indices = @transform_6, window_bounds = array<i64: 1, 2>}, {pipeline_mode = #tpu.pipeline_mode<synchronous>, transform_indices = @transform_7, window_bounds = array<i64: 2, 4>}, {pipeline_mode = #tpu.pipeline_mode<synchronous>, transform_indices = @transform_8, window_bounds = array<i64: 1, 4>}, {transform_indices = @transform_9, window_bounds = array<i64: 1, 4, 256>}]} {
    %c0 = arith.constant 0 : index
    %c0_0 = arith.constant 0 : index
    %c0_1 = arith.constant 0 : index
    %0 = vector.load %arg1[%c0, %c0_0, %c0_1] : memref<1x4x256xf32, #tpu.memory_space<vmem>>, vector<1x4x256xf32>
    %cst = arith.constant dense<0xFF800000> : vector<1x4xf32>
    %1 = vector.multi_reduction <maximumf>, %0, %cst [2] : vector<1x4x256xf32> to vector<1x4xf32>
    %cst_2 = arith.constant dense<0.000000e+00> : vector<1x4xf32>
    %2 = vector.multi_reduction <add>, %0, %cst_2 [2] : vector<1x4x256xf32> to vector<1x4xf32>
    %cst_3 = arith.constant 3.906250e-03 : f32
    %3 = vector.broadcast %cst_3 : f32 to vector<1x4xf32>
    %4 = arith.mulf %2, %3 : vector<1x4xf32>
    %c0_4 = arith.constant 0 : index
    %c0_5 = arith.constant 0 : index
    %5 = vector.load %arg2[%c0_4, %c0_5] : memref<4x2xf32, #tpu.memory_space<vmem>>, vector<4x2xf32>
    %c0_6 = arith.constant 0 : index
    %c0_7 = arith.constant 0 : index
    %6 = vector.load %arg3[%c0_6, %c0_7] : memref<1x2xf32, #tpu.memory_space<vmem>>, vector<1x2xf32>
    %c0_8 = arith.constant 0 : index
    %c0_9 = arith.constant 0 : index
    %7 = vector.load %arg4[%c0_8, %c0_9] : memref<2x4xf32, #tpu.memory_space<vmem>>, vector<2x4xf32>
    %c0_10 = arith.constant 0 : index
    %c0_11 = arith.constant 0 : index
    %8 = vector.load %arg5[%c0_10, %c0_11] : memref<1x4xf32, #tpu.memory_space<vmem>>, vector<1x4xf32>
    %cst_12 = arith.constant dense<0.000000e+00> : vector<1x2xf32>
    %9 = tpu.matmul %1, %5, %cst_12 {dimension_numbers = #tpu.dot_dimension_numbers<[1], [0], [0], [1], [0, 0, 1, 1], [], []>} : vector<1x4xf32>, vector<4x2xf32>, vector<1x2xf32> -> vector<1x2xf32>
    %10 = arith.addf %9, %6 : vector<1x2xf32>
    %cst_13 = arith.constant 0.000000e+00 : f32
    %11 = vector.broadcast %cst_13 : f32 to vector<1x2xf32>
    %12 = arith.maximumf %10, %11 : vector<1x2xf32>
    %cst_14 = arith.constant dense<0.000000e+00> : vector<1x4xf32>
    %13 = tpu.matmul %12, %7, %cst_14 {dimension_numbers = #tpu.dot_dimension_numbers<[1], [0], [0], [1], [0, 0, 1, 1], [], []>} : vector<1x2xf32>, vector<2x4xf32>, vector<1x4xf32> -> vector<1x4xf32>
    %14 = arith.addf %13, %8 : vector<1x4xf32>
    %15 = arith.negf %14 : vector<1x4xf32>
    %16 = math.exp %15 : vector<1x4xf32>
    %cst_15 = arith.constant 1.000000e+00 : f32
    %17 = vector.broadcast %cst_15 : f32 to vector<1x4xf32>
    %18 = arith.addf %17, %16 : vector<1x4xf32>
    %19 = arith.divf %17, %18 : vector<1x4xf32>
    %c0_16 = arith.constant 0 : index
    %c0_17 = arith.constant 0 : index
    %20 = vector.load %arg6[%c0_16, %c0_17] : memref<4x2xf32, #tpu.memory_space<vmem>>, vector<4x2xf32>
    %c0_18 = arith.constant 0 : index
    %c0_19 = arith.constant 0 : index
    %21 = vector.load %arg7[%c0_18, %c0_19] : memref<1x2xf32, #tpu.memory_space<vmem>>, vector<1x2xf32>
    %c0_20 = arith.constant 0 : index
    %c0_21 = arith.constant 0 : index
    %22 = vector.load %arg8[%c0_20, %c0_21] : memref<2x4xf32, #tpu.memory_space<vmem>>, vector<2x4xf32>
    %c0_22 = arith.constant 0 : index
    %c0_23 = arith.constant 0 : index
    %23 = vector.load %arg9[%c0_22, %c0_23] : memref<1x4xf32, #tpu.memory_space<vmem>>, vector<1x4xf32>
    %cst_24 = arith.constant dense<0.000000e+00> : vector<1x2xf32>
    %24 = tpu.matmul %4, %20, %cst_24 {dimension_numbers = #tpu.dot_dimension_numbers<[1], [0], [0], [1], [0, 0, 1, 1], [], []>} : vector<1x4xf32>, vector<4x2xf32>, vector<1x2xf32> -> vector<1x2xf32>
    %25 = arith.addf %24, %21 : vector<1x2xf32>
    %cst_25 = arith.constant 0.000000e+00 : f32
    %26 = vector.broadcast %cst_25 : f32 to vector<1x2xf32>
    %27 = arith.maximumf %25, %26 : vector<1x2xf32>
    %cst_26 = arith.constant dense<0.000000e+00> : vector<1x4xf32>
    %28 = tpu.matmul %27, %22, %cst_26 {dimension_numbers = #tpu.dot_dimension_numbers<[1], [0], [0], [1], [0, 0, 1, 1], [], []>} : vector<1x2xf32>, vector<2x4xf32>, vector<1x4xf32> -> vector<1x4xf32>
    %29 = arith.addf %28, %23 : vector<1x4xf32>
    %30 = arith.negf %29 : vector<1x4xf32>
    %31 = math.exp %30 : vector<1x4xf32>
    %cst_27 = arith.constant 1.000000e+00 : f32
    %32 = vector.broadcast %cst_27 : f32 to vector<1x4xf32>
    %33 = arith.addf %32, %31 : vector<1x4xf32>
    %34 = arith.divf %32, %33 : vector<1x4xf32>
    %35 = arith.addf %19, %34 : vector<1x4xf32>
    %36 = arith.negf %35 : vector<1x4xf32>
    %37 = math.exp %36 : vector<1x4xf32>
    %cst_28 = arith.constant 1.000000e+00 : f32
    %38 = vector.broadcast %cst_28 : f32 to vector<1x4xf32>
    %39 = arith.addf %38, %37 : vector<1x4xf32>
    %40 = arith.divf %38, %39 : vector<1x4xf32>
    %41 = vector.shape_cast %40 : vector<1x4xf32> to vector<1x4x1xf32>
    %42 = vector.broadcast %41 : vector<1x4x1xf32> to vector<1x4x256xf32>
    %43 = arith.mulf %0, %42 : vector<1x4x256xf32>
    %c0_29 = arith.constant 0 : index
    %c0_30 = arith.constant 0 : index
    %c0_31 = arith.constant 0 : index
    %44 = vector.load %arg10[%c0_29, %c0_30, %c0_31] : memref<1x4x256xf32, #tpu.memory_space<vmem>>, vector<1x4x256xf32>
    tpu.vector_store %arg10[%c0_29, %c0_30, %c0_31], %43 {strides = array<i32>} : memref<1x4x256xf32, #tpu.memory_space<vmem>>, vector<1x4x256xf32>,
    return
  }
  func.func @transform_0(%arg0: i32) -> (i32, i32, i32) {
    %c0_i32 = arith.constant 0 : i32
    %c0_i32_0 = arith.constant 0 : i32
    %c0_i32_1 = arith.constant 0 : i32
    return %arg0, %c0_i32, %c0_i32_0 : i32, i32, i32
  }
  func.func @transform_1(%arg0: i32) -> (i32, i32) {
    %c0_i32 = arith.constant 0 : i32
    %c0_i32_0 = arith.constant 0 : i32
    %c0_i32_1 = arith.constant 0 : i32
    return %c0_i32, %c0_i32_0 : i32, i32
  }
  func.func @transform_2(%arg0: i32) -> (i32, i32) {
    %c0_i32 = arith.constant 0 : i32
    %c0_i32_0 = arith.constant 0 : i32
    %c0_i32_1 = arith.constant 0 : i32
    return %c0_i32, %c0_i32_0 : i32, i32
  }
  func.func @transform_3(%arg0: i32) -> (i32, i32) {
    %c0_i32 = arith.constant 0 : i32
    %c0_i32_0 = arith.constant 0 : i32
    %c0_i32_1 = arith.constant 0 : i32
    return %c0_i32, %c0_i32_0 : i32, i32
  }
  func.func @transform_4(%arg0: i32) -> (i32, i32) {
    %c0_i32 = arith.constant 0 : i32
    %c0_i32_0 = arith.constant 0 : i32
    %c0_i32_1 = arith.constant 0 : i32
    return %c0_i32, %c0_i32_0 : i32, i32
  }
  func.func @transform_5(%arg0: i32) -> (i32, i32) {
    %c0_i32 = arith.constant 0 : i32
    %c0_i32_0 = arith.constant 0 : i32
    %c0_i32_1 = arith.constant 0 : i32
    return %c0_i32, %c0_i32_0 : i32, i32
  }
  func.func @transform_6(%arg0: i32) -> (i32, i32) {
    %c0_i32 = arith.constant 0 : i32
    %c0_i32_0 = arith.constant 0 : i32
    %c0_i32_1 = arith.constant 0 : i32
    return %c0_i32, %c0_i32_0 : i32, i32
  }
  func.func @transform_7(%arg0: i32) -> (i32, i32) {
    %c0_i32 = arith.constant 0 : i32
    %c0_i32_0 = arith.constant 0 : i32
    %c0_i32_1 = arith.constant 0 : i32
    return %c0_i32, %c0_i32_0 : i32, i32
  }
  func.func @transform_8(%arg0: i32) -> (i32, i32) {
    %c0_i32 = arith.constant 0 : i32
    %c0_i32_0 = arith.constant 0 : i32
    %c0_i32_1 = arith.constant 0 : i32
    return %c0_i32, %c0_i32_0 : i32, i32
  }
  func.func @transform_9(%arg0: i32) -> (i32, i32, i32) {
    %c0_i32 = arith.constant 0 : i32
    %c0_i32_0 = arith.constant 0 : i32
    %c0_i32_1 = arith.constant 0 : i32
    return %arg0, %c0_i32, %c0_i32_0 : i32, i32, i32
  }
}

module attributes {stable_mosaic.version = 11 : i64} {
  func.func @kernel(%arg0: i32, %arg1: memref<1x4x256xf32, #tpu.memory_space<vmem>>, %arg2: memref<4x2xf32, #tpu.memory_space<vmem>>, %arg3: memref<1x2xf32, #tpu.memory_space<vmem>>, %arg4: memref<2x4xf32, #tpu.memory_space<vmem>>, %arg5: memref<1x4xf32, #tpu.memory_space<vmem>>, %arg6: memref<4x2xf32, #tpu.memory_space<vmem>>, %arg7: memref<1x2xf32, #tpu.memory_space<vmem>>, %arg8: memref<2x4xf32, #tpu.memory_space<vmem>>, %arg9: memref<1x4xf32, #tpu.memory_space<vmem>>, %arg10: memref<1x4x256xf32, #tpu.memory_space<vmem>>) attributes {dimension_semantics = [#tpu.dimension_semantics<parallel>], iteration_bounds = array<i64: 2>, scalar_prefetch = 0 : i64, scratch_operands = 0 : i64, tpu.core_type = #tpu.core_type<tc>, window_params = [{transform_indices = @transform_0, window_bounds = array<i64: 1, 4, 256>}, {pipeline_mode = #tpu.pipeline_mode<synchronous>, transform_indices = @transform_1, window_bounds = array<i64: 4, 2>}, {pipeline_mode = #tpu.pipeline_mode<synchronous>, transform_indices = @transform_2, window_bounds = array<i64: 1, 2>}, {pipeline_mode = #tpu.pipeline_mode<synchronous>, transform_indices = @transform_3, window_bounds = array<i64: 2, 4>}, {pipeline_mode = #tpu.pipeline_mode<synchronous>, transform_indices = @transform_4, window_bounds = array<i64: 1, 4>}, {pipeline_mode = #tpu.pipeline_mode<synchronous>, transform_indices = @transform_5, window_bounds = array<i64: 4, 2>}, {pipeline_mode = #tpu.pipeline_mode<synchronous>, transform_indices = @transform_6, window_bounds = array<i64: 1, 2>}, {pipeline_mode = #tpu.pipeline_mode<synchronous>, transform_indices = @transform_7, window_bounds = array<i64: 2, 4>}, {pipeline_mode = #tpu.pipeline_mode<synchronous>, transform_indices = @transform_8, window_bounds = array<i64: 1, 4>}, {transform_indices = @transform_9, window_bounds = array<i64: 1, 4, 256>}]} {
    %c0 = arith.constant 0 : index
    %c0_0 = arith.constant 0 : index
    %c0_1 = arith.constant 0 : index
    %0 = vector.load %arg1[%c0, %c0_0, %c0_1] : memref<1x4x256xf32, #tpu.memory_space<vmem>>, vector<1x4x256xf32>
    %cst = arith.constant dense<0xFF800000> : vector<1x4xf32>
    %1 = vector.multi_reduction <maximumf>, %0, %cst [2] : vector<1x4x256xf32> to vector<1x4xf32>
    %cst_2 = arith.constant dense<0.000000e+00> : vector<1x4xf32>
    %2 = vector.multi_reduction <add>, %0, %cst_2 [2] : vector<1x4x256xf32> to vector<1x4xf32>
    %cst_3 = arith.constant 3.906250e-03 : f32
    %3 = vector.broadcast %cst_3 : f32 to vector<1x4xf32>
    %4 = arith.mulf %2, %3 : vector<1x4xf32>
    %c0_4 = arith.constant 0 : index
    %c0_5 = arith.constant 0 : index
    %5 = vector.load %arg2[%c0_4, %c0_5] : memref<4x2xf32, #tpu.memory_space<vmem>>, vector<4x2xf32>
    %c0_6 = arith.constant 0 : index
    %c0_7 = arith.constant 0 : index
    %6 = vector.load %arg3[%c0_6, %c0_7] : memref<1x2xf32, #tpu.memory_space<vmem>>, vector<1x2xf32>
    %c0_8 = arith.constant 0 : index
    %c0_9 = arith.constant 0 : index
    %7 = vector.load %arg4[%c0_8, %c0_9] : memref<2x4xf32, #tpu.memory_space<vmem>>, vector<2x4xf32>
    %c0_10 = arith.constant 0 : index
    %c0_11 = arith.constant 0 : index
    %8 = vector.load %arg5[%c0_10, %c0_11] : memref<1x4xf32, #tpu.memory_space<vmem>>, vector<1x4xf32>
    %cst_12 = arith.constant dense<0.000000e+00> : vector<1x2xf32>
    %9 = tpu.matmul %1, %5, %cst_12 {dimension_numbers = #tpu.dot_dimension_numbers<[1], [0], [0], [1], [0, 0, 1, 1], [], []>} : vector<1x4xf32>, vector<4x2xf32>, vector<1x2xf32> -> vector<1x2xf32>
    %10 = arith.addf %9, %6 : vector<1x2xf32>
    %cst_13 = arith.constant 0.000000e+00 : f32
    %11 = vector.broadcast %cst_13 : f32 to vector<1x2xf32>
    %12 = arith.maximumf %10, %11 : vector<1x2xf32>
    %cst_14 = arith.constant dense<0.000000e+00> : vector<1x4xf32>
    %13 = tpu.matmul %12, %7, %cst_14 {dimension_numbers = #tpu.dot_dimension_numbers<[1], [0], [0], [1], [0, 0, 1, 1], [], []>} : vector<1x2xf32>, vector<2x4xf32>, vector<1x4xf32> -> vector<1x4xf32>
    %14 = arith.addf %13, %8 : vector<1x4xf32>
    %15 = arith.negf %14 : vector<1x4xf32>
    %16 = math.exp %15 : vector<1x4xf32>
    %cst_15 = arith.constant 1.000000e+00 : f32
    %17 = vector.broadcast %cst_15 : f32 to vector<1x4xf32>
    %18 = arith.addf %17, %16 : vector<1x4xf32>
    %19 = arith.divf %17, %18 : vector<1x4xf32>
    %c0_16 = arith.constant 0 : index
    %c0_17 = arith.constant 0 : index
    %20 = vector.load %arg6[%c0_16, %c0_17] : memref<4x2xf32, #tpu.memory_space<vmem>>, vector<4x2xf32>
    %c0_18 = arith.constant 0 : index
    %c0_19 = arith.constant 0 : index
    %21 = vector.load %arg7[%c0_18, %c0_19] : memref<1x2xf32, #tpu.memory_space<vmem>>, vector<1x2xf32>
    %c0_20 = arith.constant 0 : index
    %c0_21 = arith.constant 0 : index
    %22 = vector.load %arg8[%c0_20, %c0_21] : memref<2x4xf32, #tpu.memory_space<vmem>>, vector<2x4xf32>
    %c0_22 = arith.constant 0 : index
    %c0_23 = arith.constant 0 : index
    %23 = vector.load %arg9[%c0_22, %c0_23] : memref<1x4xf32, #tpu.memory_space<vmem>>, vector<1x4xf32>
    %cst_24 = arith.constant dense<0.000000e+00> : vector<1x2xf32>
    %24 = tpu.matmul %4, %20, %cst_24 {dimension_numbers = #tpu.dot_dimension_numbers<[1], [0], [0], [1], [0, 0, 1, 1], [], []>} : vector<1x4xf32>, vector<4x2xf32>, vector<1x2xf32> -> vector<1x2xf32>
    %25 = arith.addf %24, %21 : vector<1x2xf32>
    %cst_25 = arith.constant 0.000000e+00 : f32
    %26 = vector.broadcast %cst_25 : f32 to vector<1x2xf32>
    %27 = arith.maximumf %25, %26 : vector<1x2xf32>
    %cst_26 = arith.constant dense<0.000000e+00> : vector<1x4xf32>
    %28 = tpu.matmul %27, %22, %cst_26 {dimension_numbers = #tpu.dot_dimension_numbers<[1], [0], [0], [1], [0, 0, 1, 1], [], []>} : vector<1x2xf32>, vector<2x4xf32>, vector<1x4xf32> -> vector<1x4xf32>
    %29 = arith.addf %28, %23 : vector<1x4xf32>
    %30 = arith.negf %29 : vector<1x4xf32>
    %31 = math.exp %30 : vector<1x4xf32>
    %cst_27 = arith.constant 1.000000e+00 : f32
    %32 = vector.broadcast %cst_27 : f32 to vector<1x4xf32>
    %33 = arith.addf %32, %31 : vector<1x4xf32>
    %34 = arith.divf %32, %33 : vector<1x4xf32>
    %35 = arith.addf %19, %34 : vector<1x4xf32>
    %36 = arith.negf %35 : vector<1x4xf32>
    %37 = math.exp %36 : vector<1x4xf32>
    %cst_28 = arith.constant 1.000000e+00 : f32
    %38 = vector.broadcast %cst_28 : f32 to vector<1x4xf32>
    %39 = arith.addf %38, %37 : vector<1x4xf32>
    %40 = arith.divf %38, %39 : vector<1x4xf32>
    %41 = vector.shape_cast %40 : vector<1x4xf32> to vector<1x4x1xf32>
    %42 = vector.broadcast %41 : vector<1x4x1xf32> to vector<1x4x256xf32>
    %43 = arith.mulf %0, %42 : vector<1x4x256xf32>
    %c0_29 = arith.constant 0 : index
    %c0_30 = arith.constant 0 : index
    %c0_31 = arith.constant 0 : index
    %44 = vector.load %arg10[%c0_29, %c0_30, %c0_31] : memref<1x4x256xf32, #tpu.memory_space<vmem>>, vector<1x4x256xf32>
    tpu.vector_store %arg10[%c0_29, %c0_30, %c0_31], %43 {strides = array<i32>} : memref<1x4x256xf32, #tpu.memory_space<vmem>>, vector<1x4x256xf32>,
    return
  }
  func.func @transform_0(%arg0: i32) -> (i32, i32, i32) {
    %c0_i32 = arith.constant 0 : i32
    %c0_i32_0 = arith.constant 0 : i32
    %c0_i32_1 = arith.constant 0 : i32
    return %arg0, %c0_i32, %c0_i32_0 : i32, i32, i32
  }
  func.func @transform_1(%arg0: i32) -> (i32, i32) {
    %c0_i32 = arith.constant 0 : i32
    %c0_i32_0 = arith.constant 0 : i32
    %c0_i32_1 = arith.constant 0 : i32
    return %c0_i32, %c0_i32_0 : i32, i32
  }
  func.func @transform_2(%arg0: i32) -> (i32, i32) {
    %c0_i32 = arith.constant 0 : i32
    %c0_i32_0 = arith.constant 0 : i32
    %c0_i32_1 = arith.constant 0 : i32
    return %c0_i32, %c0_i32_0 : i32, i32
  }
  func.func @transform_3(%arg0: i32) -> (i32, i32) {
    %c0_i32 = arith.constant 0 : i32
    %c0_i32_0 = arith.constant 0 : i32
    %c0_i32_1 = arith.constant 0 : i32
    return %c0_i32, %c0_i32_0 : i32, i32
  }
  func.func @transform_4(%arg0: i32) -> (i32, i32) {
    %c0_i32 = arith.constant 0 : i32
    %c0_i32_0 = arith.constant 0 : i32
    %c0_i32_1 = arith.constant 0 : i32
    return %c0_i32, %c0_i32_0 : i32, i32
  }
  func.func @transform_5(%arg0: i32) -> (i32, i32) {
    %c0_i32 = arith.constant 0 : i32
    %c0_i32_0 = arith.constant 0 : i32
    %c0_i32_1 = arith.constant 0 : i32
    return %c0_i32, %c0_i32_0 : i32, i32
  }
  func.func @transform_6(%arg0: i32) -> (i32, i32) {
    %c0_i32 = arith.constant 0 : i32
    %c0_i32_0 = arith.constant 0 : i32
    %c0_i32_1 = arith.constant 0 : i32
    return %c0_i32, %c0_i32_0 : i32, i32
  }
  func.func @transform_7(%arg0: i32) -> (i32, i32) {
    %c0_i32 = arith.constant 0 : i32
    %c0_i32_0 = arith.constant 0 : i32
    %c0_i32_1 = arith.constant 0 : i32
    return %c0_i32, %c0_i32_0 : i32, i32
  }
  func.func @transform_8(%arg0: i32) -> (i32, i32) {
    %c0_i32 = arith.constant 0 : i32
    %c0_i32_0 = arith.constant 0 : i32
    %c0_i32_1 = arith.constant 0 : i32
    return %c0_i32, %c0_i32_0 : i32, i32
  }
  func.func @transform_9(%arg0: i32) -> (i32, i32, i32) {
    %c0_i32 = arith.constant 0 : i32
    %c0_i32_0 = arith.constant 0 : i32
    %c0_i32_1 = arith.constant 0 : i32
    return %arg0, %c0_i32, %c0_i32_0 : i32, i32, i32
  }
}

</mosaic_0001>

<bundles_post_ra>
// kernel: tpu_custom_call.1
= control target key start
LH: loop header
LB: loop body
LE: loop exit
PB: predicated region body
PF: predicated region fallthrough
CT: control target
= control target key end

     0   :  { %14 = vsyncpa [#allocation3], 0  ;;  %s1271_s0 = inlined_call_operand.hbm [shape: f32[2,4,256], index: 0, kind: input, shape index: {}]   ;;  %s1272_s1 = inlined_call_operand.vmem [shape: f32[4,2], index: 1, kind: input, shape index: {}]   ;;  %s1273_s2 = inlined_call_operand.vmem [shape: f32[1,2], index: 2, kind: input, shape index: {}]   ;;  %s1274_s3 = inlined_call_operand.vmem [shape: f32[2,4], index: 3, kind: input, shape index: {}]   ;;  %s1275_s4 = inlined_call_operand.vmem [shape: f32[1,4], index: 4, kind: input, shape index: {}]   ;;  %s1276_s5 = inlined_call_operand.vmem [shape: f32[4,2], index: 5, kind: input, shape index: {}]   ;;  %s1277_s6 = inlined_call_operand.vmem [shape: f32[1,2], index: 6, kind: input, shape index: {}]   ;;  %s1278_s7 = inlined_call_operand.vmem [shape: f32[2,4], index: 7, kind: input, shape index: {}]   ;;  %s1279_s8 = inlined_call_operand.vmem [shape: f32[1,4], index: 8, kind: input, shape index: {}]   ;;  %s1280_s9 = inlined_call_operand.hbm [shape: f32[2,4,256], index: 9, kind: output, shape index: {}]  }
   0x1   :  { %16 = vsyncpa [#allocation3 + $0x1], 0 }
   0x2   :  { %17 = vsyncpa [#allocation4], 0 }
   0x3   :  { %19 = vsyncpa [#allocation4 + $0x1], 0  ;;  %s1080_s30 = smov 0   ;;  %s1082_s10 = smov 0  }
   0x4   :  { %s1084_s11 = smov 0   ;;  %s1086_s12 = smov 0  }
   0x5 LB: > { %1284 = sst [smem:[#allocation8_spill]] %s1019_s11  ;;  %s1101_s13 = sadd.s32 4294967295, %s1023_s12   ;;  %s1023_s12 = sphi %s1086_s12, %s1301_s12   ;;  %s1019_s11 = sphi %s1084_s11, %s1298_s11   ;;  %s1015_s10 = sphi %s1082_s10, %s1300_s10   ;;  %s1011_s30 = sphi %s1080_s30, %s1299_s30  }
   0x6   : > { %s814_s14 = sadd.s32 4294967294, %s1023_s12   ;;  %s1105_s15 = sadd.s32 1, %s1023_s12  }
   0x7   : > { %s32_s16 = sadd.s32 1, %s1019_s11  ;;  %s29_s17 = ssub.s32 %s1023_s12, %s1105_s15 }
   0x8   : > { %p39_p0 = scmp.ne.s32.totalorder %s1019_s11, %s1015_s10  ;;  %p30_p1 = scmp.eq.s32.totalorder %s29_s17, 0 }
   0x9   : > { %p40_p2 = scmp.eq.s32.totalorder %s1023_s12, 0  ;;  %p45_p3 = scmp.ne.s32.totalorder %s1015_s10, %s1011_s30 }
   0xa   : > { %p46_p4 = scmp.eq.s32.totalorder %s1101_s13, 0  ;;  %p237_p7 = scmp.eq.s32.totalorder %s1101_s13, 1 }
   0xb   : > { %s1117_s18 = scalar_select %p30_p1, %s1019_s11, %s32_s16  }
   0xc   : > { %p1119_p5 = por %p40_p2, %p39_p0  ;;  %p1123_p6 = por %p46_p4, %p45_p3 }
   0xd   : > { %1285 = sst [smem:[#allocation9_spill]] %s1117_s18  ;;  %p243_p8 = scmp.eq.s32.totalorder %s814_s14, 1 }
   0xe   : > { %s1287_s20 = scalar_select %p1123_p6, 1, 0 }
   0xf   : > { %p881_p10 = scmp.lt.s32.totalorder %s1023_s12, 2  ;;  %p1130_p11 = por %p237_p7, %p39_p0 }
  0x10   : > { %p1134_p12 = por %p243_p8, %p45_p3  ;;  %s287_s23 = sand.u32 1, %s1019_s11  }
  0x11   : > { %s1288_s21 = scalar_select %p1130_p11, 1, 0 }
  0x12   : > { %s1289_s22 = scalar_select %p1134_p12, 1, 0 }
  0x13   : > { %s839_s24 = sshll.u32 %s1023_s12, 7  ;;  %s817_s25 = sshll.u32 %s287_s23, 3 }
  0x14   : > { %s1143_s28 = scalar_lea.hbm %s1271_s0, %s839_s24  ;;  %s291_s29 = scalar_lea.vmem [#allocation2], %s817_s25 }
  0x15   : > { %s299_s14 = sshll.u32 %s291_s29, 4  ;;  %p1147_p13 = pnand %p881_p10, %p1119_p5  ;;  %s1151_s14 = int_to_ptr.vmem [resolvable:$true] %s299_s14 }
  0x16   : > { %s288_s17 = scalar_lea.sflag [#allocation3], %s287_s23  ;;  %s931_s18 = scalar_lea.hbm %s1143_s28, 128 }
  0x17   : > { %p932_p2 = scmp.ne.s32.totalorder %s1143_s28, %s931_s18  ;;  %p933_p3 = pneg %p1147_p13 }
  0x18   : > { %s936_s19 = scalar_lea.hbm %s1271_s0, 256  ;;  %p937_p5 = scmp.lt.s32.totalorder %s1143_s28, %s1271_s0 }
  0x19   : > { %p934_p4 = pnand %p933_p3, %p932_p2  ;;  %p938_p8 = scmp.lt.s32.totalorder %s936_s19, %s931_s18 }
  0x1b   : > { %p935_p7 = pneg %p934_p4  ;;  %p939_p10 = por %p938_p8, %p937_p5 }
  0x1d   : > { %p940_p9 = pnand %p939_p10, %p935_p7 }
  0x1f   : > { %943 = shalt.err (!%p940_p9)
}
  0x20   : > { %s944_s23 = scalar_lea.vmem %s1151_s14, 128  ;;  %s1025_s29 = smov [#allocation2]  }
  0x21   : > { %p945_p0 = scmp.ne.s32.totalorder %s1151_s14, %s944_s23  ;;  %s949_s11 = sshll.u32 %s1025_s29, 4  ;;  %s950_s11 = int_to_ptr.vmem [resolvable:$false] %s949_s11 }
  0x22   : > { %s951_s24 = scalar_lea.vmem %s950_s11, 256  ;;  %p952_p4 = scmp.lt.s32.totalorder %s1151_s14, %s950_s11 }
  0x23   : > { %p947_p1 = pnand %p945_p0, %p933_p3  ;;  %p953_p12 = scmp.lt.s32.totalorder %s951_s24, %s944_s23 }
  0x25   : > { %p948_p2 = pneg %p947_p1  ;;  %p954_p11 = por %p953_p12, %p952_p4 }
  0x27   : > { %p955_p6 = pnand %p954_p11, %p948_p2 }
  0x29   : > { %958 = shalt.err (!%p955_p6)
}
  0x2a   : > { %876 = dma.hbm_to_vmem [thread:$0]  (!%p1147_p13), %s1143_s28, 128, %s1151_s14, %s288_s17  }
  0x2b   : > { %p1291_p9 = scmp.lt.s32.totalorder %s1023_s12, 3  ;;  %p1292_p7 = scmp.ge.s32.totalorder %s1023_s12, 1 }
  0x2d   : > { %p305_p0 = pnand %p1292_p7, %p1291_p9 }
  0x2e   : > { %s1178_s18 = sand.u32 (!%p305_p0), 1, %s1015_s10   ;;  %p1293_p6 = scmp.ne.s32.totalorder (!%p305_p0), %s1287_s20, 0 }
  0x2f   : > { %308 = sbr.rel (%p305_p0) target bundleno = 797 (0x31d), region = 56  ;;  %s821_s11 = sshll.u32 (!%p305_p0), %s1178_s18, 3 }
  0x30   : > { %s311_s25 = scalar_lea.sflag (!%p305_p0), [#allocation3], %s1178_s18  ;;  %s314_s16 = scalar_lea.vmem (!%p305_p0), [#allocation2], %s821_s11 }
  0x34   : > { %1002 = dma.done.wait (%p1293_p6), %s311_s25, 128  }
  0x35   : > { %1004 = vsyncadd (%p1293_p6), %s311_s25, 4294967168  ;;  %vm353_vm0 = vcmask 1043456   ;;  %v1188_v0 = vld [vmem:[%s314_s16] sm:$0xff]  ;;  %v1026_v8 = vmov 0.0   ;;  %vm1027_vm1 = vmmov 0   ;;  %v370_v10 = vlaneseq  ;;  %s840_s19 = sshll.u32 %s1101_s13, 7 }
  0x36   : > { %v351_v1 = vcombine.high %v1188_v0, %v1188_v0  ;;  %v354_v2 = vsel %vm353_vm0, %v1188_v0, -inf  ;;  %v359_v4 = vsel %vm353_vm0, %v1188_v0, 0.0  ;;  %849 = vmatprep.subr.mxu0 %v1026_v8  ;;  %v365_v9 = vld [vmem:[%s1272_s1] sm:$0xf]  ;;  %854 = vmatprep.subr.mxu1 %v1026_v8  ;;  %vm376_vm2 = vcmask 31744   ;;  %s348_s26 = scalar_lea.vmem [#allocation5], %s821_s11  ;;  %s742_s24 = scalar_lea.hbm %s1280_s9, %s840_s19 }
  0x37   : > { %850 = vmatpush3.msk.msra.mxu0 %vm353_vm0, %v365_v9  ;;  %851 = vmatprep.mubr.msk.f32.mxu0 %vm1027_vm1, %v1026_v8  ;;  %v371_v11 = vand.u32 127, %v370_v10  ;;  %v1204_v12 = vshrl.u32 %v370_v10, 7  ;;  %v537_v16 = vld [vmem:[%s1276_s5] sm:$0xf]  ;;  %vm457_vm3 = vcmask 1041408   ;;  %vm453_vm4 = vcmask 15360  }
  0x38   : > { %v355_v3 = vsel %vm353_vm0, %v351_v1, -inf  ;;  %v360_v5 = vsel %vm353_vm0, %v351_v1, 0.0  ;;  %859 = vmatprep.subr.mxu0 %v1026_v8  ;;  %856 = vmatprep.mubr.msk.f32.mxu1 %vm1027_vm1, %v1026_v8  ;;  %v367_v20 = vld [vmem:[%s1274_s3] sm:$0x3]  ;;  %v1028_v55 = vmov 839922192  }
  0x39   : > { %v356_v6 = vmax.f32 %v354_v2, %v355_v3  ;;  %v361_v7 = vadd.f32 %v360_v5, %v359_v4  ;;  %v374_v13 = vsub.s32 %v371_v11, %v1204_v12  ;;  %855 = vmatpush3.msk.msra.mxu1 %vm457_vm3, %v367_v20  ;;  %v366_v21 = vld [vmem:[%s1273_s2] sm:$0x1]  ;;  %v713_v52 = vsub.s32 0, %v1204_v12  ;;  %s744_s27 = sshll.u32 %s348_s26, 4  ;;  %s730_s25 = scalar_lea.sflag [#allocation4], %s1178_s18  ;;  %s745_s27 = int_to_ptr.vmem [resolvable:$true] %s744_s27 }
  0x3a   : > { %864 = vmatprep.subr.mxu1 %v1026_v8  ;;  %v539_v26 = vld [vmem:[%s1278_s7] sm:$0x3]  ;;  %v720_v56 = vunpack.c.l.s4 %v1028_v55  ;;  %s959_s16 = scalar_lea.vmem %s745_s27, 128  ;;  %p1294_p12 = scmp.ne.s32.totalorder %s1288_s21, 0 }
  0x3b   : > { %357 = vmax.xlane.f32.xlu0 %v356_v6  ;;  %v538_v27 = vld [vmem:[%s1277_s6] sm:$0x1]  ;;  %p960_p11 = scmp.ne.s32.totalorder %s745_s27, %s959_s16  ;;  %s1029_s20 = smov [#allocation5]  }
  0x3c   : > { %v368_v32 = vld [vmem:[%s1275_s4] sm:$0x1]  ;;  %v721_v57 = vunpack.c.0.s8 %v720_v56  ;;  %s963_s13 = sshll.u32 %s1029_s20, 4  ;;  %s964_s13 = int_to_ptr.vmem [resolvable:$false] %s963_s13 }
  0x3d   : > { %v540_v37 = vld [vmem:[%s1279_s8] sm:$0x1]  ;;  %p961_p13 = pnand %p960_p11, %p1294_p12  ;;  %s965_s11 = scalar_lea.vmem %s964_s13, 256 }
  0x3e   : > { %v724_v58 = vsub.s32 %v721_v57, %v1204_v12  ;;  %p966_p3 = scmp.lt.s32.totalorder %s745_s27, %s964_s13  ;;  %p967_p5 = scmp.lt.s32.totalorder %s965_s11, %s959_s16 }
  0x3f   : > { %362 = vadd.xlane.f32.xlu0 %v361_v7  ;;  %p962_p1 = pneg %p961_p13 }
  0x40   : > { %p968_p8 = por %p967_p5, %p966_p3 }
  0x42   : > { %p969_p10 = pnand %p968_p8, %p962_p1 }
  0xc4   : > { %v358_v14 = vpop.xlane.xlu0 %357 }
  0xc5   : > { %v375_v15 = vrot.slane %v358_v14, %v374_v13 }
  0xc7   : > { %852 = vmatmul.mubr.msk.f32.vlgmr.msra.gmra.mxu0 %vm376_vm2, %v375_v15 }
  0xc8   : > { %v363_v17 = vpop.xlane.xlu0 %362  ;;  %860 = vmatpush3.msk.msra.mxu0 %vm353_vm0, %v537_v16  ;;  %861 = vmatprep.mubr.msk.f32.mxu0 %vm1027_vm1, %v1026_v8 }
  0xc9   : > { %v364_v18 = vmul.f32 0.00390625, %v363_v17 }
  0xcb   : > { %v545_v19 = vrot.slane %v364_v18, %v374_v13 }
  0xcd   : > { %862 = vmatmul.mubr.msk.f32.vlgmr.msra.gmra.mxu0 %vm376_vm2, %v545_v19 }
 0x187   : > { %v448_v22 = vpop.f32.mrf.mxu0 }
 0x188   : > { %v449_v23 = vadd.f32 %v448_v22, %v366_v21 }
 0x189   : > { %v853_v24 = vpop.f32.mrf.mxu0 }
 0x18a   : > { %v452_v25 = vmax.f32 %v449_v23, 0.0 }
 0x18c   : > { %857 = vmatmul.mubr.msk.f32.vlgmr.msra.gmra.mxu1 %vm453_vm4, %v452_v25 }
 0x18d   : > { %v617_v28 = vpop.f32.mrf.mxu0  ;;  %865 = vmatpush3.msk.msra.mxu1 %vm457_vm3, %v539_v26  ;;  %866 = vmatprep.mubr.msk.f32.mxu1 %vm1027_vm1, %v1026_v8 }
 0x18e   : > { %v618_v29 = vadd.f32 %v617_v28, %v538_v27 }
 0x18f   : > { %v863_v30 = vpop.f32.mrf.mxu0 }
 0x190   : > { %v621_v31 = vmax.f32 %v618_v29, 0.0 }
 0x192   : > { %867 = vmatmul.mubr.msk.f32.vlgmr.msra.gmra.mxu1 %vm453_vm4, %v621_v31 }
 0x24c   : > { %v527_v33 = vpop.f32.mrf.mxu1 }
 0x24d   : > { %v528_v34 = vadd.f32 %v527_v33, %v368_v32 }
 0x24e   : > { %v858_v35 = vpop.f32.mrf.mxu1 }
 0x24f   : > { %v827_v36 = vmul.f32 -1.442695, %v528_v34 }
 0x251   : > { %919 = vpow2.f32 %v827_v36 }
 0x252   : > { %v694_v38 = vpop.f32.mrf.mxu1 }
 0x253   : > { %v695_v39 = vadd.f32 %v694_v38, %v540_v37 }
 0x254   : > { %v868_v40 = vpop.f32.mrf.mxu1 }
 0x255   : > { %v832_v41 = vmul.f32 -1.442695, %v695_v39 }
 0x257   : > { %921 = vpow2.f32 %v832_v41 }
 0x25e   : > { %v920_v42 = vpop.eup %919 }
 0x25f   : > { %v534_v43 = vadd.f32 1.0, %v920_v42 }
 0x261   : > { %923 = vrcp.f32 %v534_v43 }
 0x264   : > { %v922_v44 = vpop.eup %921 }
 0x265   : > { %v701_v45 = vadd.f32 1.0, %v922_v44 }
 0x267   : > { %925 = vrcp.f32 %v701_v45 }
 0x26e   : > { %v924_v46 = vpop.eup %923 }
 0x274   : > { %v926_v47 = vpop.eup %925 }
 0x275   : > { %v704_v48 = vadd.f32 %v926_v47, %v924_v46 }
 0x277   : > { %v833_v49 = vmul.f32 -1.442695, %v704_v48 }
 0x279   : > { %927 = vpow2.f32 %v833_v49 }
 0x286   : > { %v928_v50 = vpop.eup %927 }
 0x287   : > { %v708_v51 = vadd.f32 1.0, %v928_v50 }
 0x289   : > { %929 = vrcp.f32 %v708_v51 }
 0x296   : > { %v930_v53 = vpop.eup %929 }
 0x297   : > { %v714_v54 = vrot.slane %v930_v53, %v713_v52 }
 0x299   : > { %716 = vbcast.lane.b32.xlu1 %v714_v54, 256 }
 0x30b   : > { %v717_v59 = vpop.permute.xlu1 %716 }
 0x30c   : > { %v725_v60 = vrot.slane %v717_v59, %v724_v58 }
 0x30e   : > { %v727_v61 = vmul.f32 %v725_v60, %v1188_v0 }
 0x310   : > { %728 = vst [vmem:[%s348_s26] sm:$0xff] %v727_v61 }
 0x311   : > { %972 = shalt.err (!%p969_p10)
}
 0x312   : > { %s973_s28 = scalar_lea.hbm %s742_s24, 128  ;;  %s977_s17 = scalar_lea.hbm %s1280_s9, 256 }
 0x313   : > { %p974_p2 = scmp.ne.s32.totalorder %s742_s24, %s973_s28  ;;  %p978_p7 = scmp.lt.s32.totalorder %s742_s24, %s1280_s9 }
 0x314   : > { %p979_p0 = scmp.lt.s32.totalorder %s977_s17, %s973_s28 }
 0x315   : > { %p975_p4 = pnand %p974_p2, %p1294_p12 }
 0x316   : > { %p980_p6 = por %p979_p0, %p978_p7 }
 0x317   : > { %p976_p9 = pneg %p975_p4 }
 0x319   : > { %p981_p11 = pnand %p980_p6, %p976_p9 }
 0x31b   : > { %984 = shalt.err (!%p981_p11)
}
 0x31c   : > { %871 = dma.vmem_to_hbm [thread:$0]  (%p1294_p12), %s745_s27, 128, %s742_s24, %s730_s25  }
 0x31d PF: > { %s756_s23 = sand.u32 1, %s1011_s30   ;;  %p1295_p13 = scmp.ne.s32.totalorder %s1289_s22, 0 }
 0x31e   : > { %p1296_p1 = scmp.ge.s32.totalorder %s1023_s12, 2  ;;  %s757_s29 = scalar_lea.sflag [#allocation4], %s756_s23 }
 0x320   : > { %p878_p3 = pnand %p1296_p1, %p1295_p13 }
 0x322   : > { %p879_p5 = pneg %p878_p3 }
 0x324   : > { %1006 = dma.done.wait (%p879_p5), %s757_s29, 128  }
 0x325   : > { %1008 = vsyncadd (%p879_p5), %s757_s29, 4294967168  ;;  %s1297_s16 = sld [smem:[#allocation8_spill]]  ;;  %p22_p8 = scmp.ge.s32.totalorder %s1105_s15, 4  }
 0x326   : > { %s1298_s11 = sld [smem:[#allocation9_spill]]  ;;  %s1299_s30 = smov %s1015_s10 }
 0x327   : > { %s1301_s12 = smov %s1105_s15  ;;  %24 = sbr.rel (!%p22_p8) target bundleno = 5 (0x5), region = 101 }
 0x32b   : > { %s1300_s10 = smov %s1297_s16 }
 0x32c   :  { %762 = vsyncpa [#allocation3], 1 }
 0x32d   :  { %764 = vsyncpa [#allocation3 + $0x1], 1 }
 0x32e   :  { %765 = vsyncpa [#allocation4], 1 }
 0x32f   :  { %767 = vsyncpa [#allocation4 + $0x1], 1 }

// kernel: tpu_custom_call.1
= control target key start
LH: loop header
LB: loop body
LE: loop exit
PB: predicated region body
PF: predicated region fallthrough
CT: control target
= control target key end

     0   :  { %14 = vsyncpa [#allocation3], 0  ;;  %s1271_s0 = inlined_call_operand.hbm [shape: f32[2,4,256], index: 0, kind: input, shape index: {}]   ;;  %s1272_s1 = inlined_call_operand.vmem [shape: f32[4,2], index: 1, kind: input, shape index: {}]   ;;  %s1273_s2 = inlined_call_operand.vmem [shape: f32[1,2], index: 2, kind: input, shape index: {}]   ;;  %s1274_s3 = inlined_call_operand.vmem [shape: f32[2,4], index: 3, kind: input, shape index: {}]   ;;  %s1275_s4 = inlined_call_operand.vmem [shape: f32[1,4], index: 4, kind: input, shape index: {}]   ;;  %s1276_s5 = inlined_call_operand.vmem [shape: f32[4,2], index: 5, kind: input, shape index: {}]   ;;  %s1277_s6 = inlined_call_operand.vmem [shape: f32[1,2], index: 6, kind: input, shape index: {}]   ;;  %s1278_s7 = inlined_call_operand.vmem [shape: f32[2,4], index: 7, kind: input, shape index: {}]   ;;  %s1279_s8 = inlined_call_operand.vmem [shape: f32[1,4], index: 8, kind: input, shape index: {}]   ;;  %s1280_s9 = inlined_call_operand.hbm [shape: f32[2,4,256], index: 9, kind: output, shape index: {}]  }
   0x1   :  { %16 = vsyncpa [#allocation3 + $0x1], 0 }
   0x2   :  { %17 = vsyncpa [#allocation4], 0 }
   0x3   :  { %19 = vsyncpa [#allocation4 + $0x1], 0  ;;  %s1080_s30 = smov 0   ;;  %s1082_s10 = smov 0  }
   0x4   :  { %s1084_s11 = smov 0   ;;  %s1086_s12 = smov 0  }
   0x5 LB: > { %1284 = sst [smem:[#allocation8_spill]] %s1019_s11  ;;  %s1101_s13 = sadd.s32 4294967295, %s1023_s12   ;;  %s1023_s12 = sphi %s1086_s12, %s1301_s12   ;;  %s1019_s11 = sphi %s1084_s11, %s1298_s11   ;;  %s1015_s10 = sphi %s1082_s10, %s1300_s10   ;;  %s1011_s30 = sphi %s1080_s30, %s1299_s30  }
   0x6   : > { %s814_s14 = sadd.s32 4294967294, %s1023_s12   ;;  %s1105_s15 = sadd.s32 1, %s1023_s12  }
   0x7   : > { %s32_s16 = sadd.s32 1, %s1019_s11  ;;  %s29_s17 = ssub.s32 %s1023_s12, %s1105_s15 }
   0x8   : > { %p39_p0 = scmp.ne.s32.totalorder %s1019_s11, %s1015_s10  ;;  %p30_p1 = scmp.eq.s32.totalorder %s29_s17, 0 }
   0x9   : > { %p40_p2 = scmp.eq.s32.totalorder %s1023_s12, 0  ;;  %p45_p3 = scmp.ne.s32.totalorder %s1015_s10, %s1011_s30 }
   0xa   : > { %p46_p4 = scmp.eq.s32.totalorder %s1101_s13, 0  ;;  %p237_p7 = scmp.eq.s32.totalorder %s1101_s13, 1 }
   0xb   : > { %s1117_s18 = scalar_select %p30_p1, %s1019_s11, %s32_s16  }
   0xc   : > { %p1119_p5 = por %p40_p2, %p39_p0  ;;  %p1123_p6 = por %p46_p4, %p45_p3 }
   0xd   : > { %1285 = sst [smem:[#allocation9_spill]] %s1117_s18  ;;  %p243_p8 = scmp.eq.s32.totalorder %s814_s14, 1 }
   0xe   : > { %s1287_s20 = scalar_select %p1123_p6, 1, 0 }
   0xf   : > { %p881_p10 = scmp.lt.s32.totalorder %s1023_s12, 2  ;;  %p1130_p11 = por %p237_p7, %p39_p0 }
  0x10   : > { %p1134_p12 = por %p243_p8, %p45_p3  ;;  %s287_s23 = sand.u32 1, %s1019_s11  }
  0x11   : > { %s1288_s21 = scalar_select %p1130_p11, 1, 0 }
  0x12   : > { %s1289_s22 = scalar_select %p1134_p12, 1, 0 }
  0x13   : > { %s839_s24 = sshll.u32 %s1023_s12, 7  ;;  %s817_s25 = sshll.u32 %s287_s23, 3 }
  0x14   : > { %s1143_s28 = scalar_lea.hbm %s1271_s0, %s839_s24  ;;  %s291_s29 = scalar_lea.vmem [#allocation2], %s817_s25 }
  0x15   : > { %s299_s14 = sshll.u32 %s291_s29, 4  ;;  %p1147_p13 = pnand %p881_p10, %p1119_p5  ;;  %s1151_s14 = int_to_ptr.vmem [resolvable:$true] %s299_s14 }
  0x16   : > { %s288_s17 = scalar_lea.sflag [#allocation3], %s287_s23  ;;  %s931_s18 = scalar_lea.hbm %s1143_s28, 128 }
  0x17   : > { %p932_p2 = scmp.ne.s32.totalorder %s1143_s28, %s931_s18  ;;  %p933_p3 = pneg %p1147_p13 }
  0x18   : > { %s936_s19 = scalar_lea.hbm %s1271_s0, 256  ;;  %p937_p5 = scmp.lt.s32.totalorder %s1143_s28, %s1271_s0 }
  0x19   : > { %p934_p4 = pnand %p933_p3, %p932_p2  ;;  %p938_p8 = scmp.lt.s32.totalorder %s936_s19, %s931_s18 }
  0x1b   : > { %p935_p7 = pneg %p934_p4  ;;  %p939_p10 = por %p938_p8, %p937_p5 }
  0x1d   : > { %p940_p9 = pnand %p939_p10, %p935_p7 }
  0x1f   : > { %943 = shalt.err (!%p940_p9)
}
  0x20   : > { %s944_s23 = scalar_lea.vmem %s1151_s14, 128  ;;  %s1025_s29 = smov [#allocation2]  }
  0x21   : > { %p945_p0 = scmp.ne.s32.totalorder %s1151_s14, %s944_s23  ;;  %s949_s11 = sshll.u32 %s1025_s29, 4  ;;  %s950_s11 = int_to_ptr.vmem [resolvable:$false] %s949_s11 }
  0x22   : > { %s951_s24 = scalar_lea.vmem %s950_s11, 256  ;;  %p952_p4 = scmp.lt.s32.totalorder %s1151_s14, %s950_s11 }
  0x23   : > { %p947_p1 = pnand %p945_p0, %p933_p3  ;;  %p953_p12 = scmp.lt.s32.totalorder %s951_s24, %s944_s23 }
  0x25   : > { %p948_p2 = pneg %p947_p1  ;;  %p954_p11 = por %p953_p12, %p952_p4 }
  0x27   : > { %p955_p6 = pnand %p954_p11, %p948_p2 }
  0x29   : > { %958 = shalt.err (!%p955_p6)
}
  0x2a   : > { %876 = dma.hbm_to_vmem [thread:$0]  (!%p1147_p13), %s1143_s28, 128, %s1151_s14, %s288_s17  }
  0x2b   : > { %p1291_p9 = scmp.lt.s32.totalorder %s1023_s12, 3  ;;  %p1292_p7 = scmp.ge.s32.totalorder %s1023_s12, 1 }
  0x2d   : > { %p305_p0 = pnand %p1292_p7, %p1291_p9 }
  0x2e   : > { %s1178_s18 = sand.u32 (!%p305_p0), 1, %s1015_s10   ;;  %p1293_p6 = scmp.ne.s32.totalorder (!%p305_p0), %s1287_s20, 0 }
  0x2f   : > { %308 = sbr.rel (%p305_p0) target bundleno = 797 (0x31d), region = 56  ;;  %s821_s11 = sshll.u32 (!%p305_p0), %s1178_s18, 3 }
  0x30   : > { %s311_s25 = scalar_lea.sflag (!%p305_p0), [#allocation3], %s1178_s18  ;;  %s314_s16 = scalar_lea.vmem (!%p305_p0), [#allocation2], %s821_s11 }
  0x34   : > { %1002 = dma.done.wait (%p1293_p6), %s311_s25, 128  }
  0x35   : > { %1004 = vsyncadd (%p1293_p6), %s311_s25, 4294967168  ;;  %vm353_vm0 = vcmask 1043456   ;;  %v1188_v0 = vld [vmem:[%s314_s16] sm:$0xff]  ;;  %v1026_v8 = vmov 0.0   ;;  %vm1027_vm1 = vmmov 0   ;;  %v370_v10 = vlaneseq  ;;  %s840_s19 = sshll.u32 %s1101_s13, 7 }
  0x36   : > { %v351_v1 = vcombine.high %v1188_v0, %v1188_v0  ;;  %v354_v2 = vsel %vm353_vm0, %v1188_v0, -inf  ;;  %v359_v4 = vsel %vm353_vm0, %v1188_v0, 0.0  ;;  %849 = vmatprep.subr.mxu0 %v1026_v8  ;;  %v365_v9 = vld [vmem:[%s1272_s1] sm:$0xf]  ;;  %854 = vmatprep.subr.mxu1 %v1026_v8  ;;  %vm376_vm2 = vcmask 31744   ;;  %s348_s26 = scalar_lea.vmem [#allocation5], %s821_s11  ;;  %s742_s24 = scalar_lea.hbm %s1280_s9, %s840_s19 }
  0x37   : > { %850 = vmatpush3.msk.msra.mxu0 %vm353_vm0, %v365_v9  ;;  %851 = vmatprep.mubr.msk.f32.mxu0 %vm1027_vm1, %v1026_v8  ;;  %v371_v11 = vand.u32 127, %v370_v10  ;;  %v1204_v12 = vshrl.u32 %v370_v10, 7  ;;  %v537_v16 = vld [vmem:[%s1276_s5] sm:$0xf]  ;;  %vm457_vm3 = vcmask 1041408   ;;  %vm453_vm4 = vcmask 15360  }
  0x38   : > { %v355_v3 = vsel %vm353_vm0, %v351_v1, -inf  ;;  %v360_v5 = vsel %vm353_vm0, %v351_v1, 0.0  ;;  %859 = vmatprep.subr.mxu0 %v1026_v8  ;;  %856 = vmatprep.mubr.msk.f32.mxu1 %vm1027_vm1, %v1026_v8  ;;  %v367_v20 = vld [vmem:[%s1274_s3] sm:$0x3]  ;;  %v1028_v55 = vmov 839922192  }
  0x39   : > { %v356_v6 = vmax.f32 %v354_v2, %v355_v3  ;;  %v361_v7 = vadd.f32 %v360_v5, %v359_v4  ;;  %v374_v13 = vsub.s32 %v371_v11, %v1204_v12  ;;  %855 = vmatpush3.msk.msra.mxu1 %vm457_vm3, %v367_v20  ;;  %v366_v21 = vld [vmem:[%s1273_s2] sm:$0x1]  ;;  %v713_v52 = vsub.s32 0, %v1204_v12  ;;  %s744_s27 = sshll.u32 %s348_s26, 4  ;;  %s730_s25 = scalar_lea.sflag [#allocation4], %s1178_s18  ;;  %s745_s27 = int_to_ptr.vmem [resolvable:$true] %s744_s27 }
  0x3a   : > { %864 = vmatprep.subr.mxu1 %v1026_v8  ;;  %v539_v26 = vld [vmem:[%s1278_s7] sm:$0x3]  ;;  %v720_v56 = vunpack.c.l.s4 %v1028_v55  ;;  %s959_s16 = scalar_lea.vmem %s745_s27, 128  ;;  %p1294_p12 = scmp.ne.s32.totalorder %s1288_s21, 0 }
  0x3b   : > { %357 = vmax.xlane.f32.xlu0 %v356_v6  ;;  %v538_v27 = vld [vmem:[%s1277_s6] sm:$0x1]  ;;  %p960_p11 = scmp.ne.s32.totalorder %s745_s27, %s959_s16  ;;  %s1029_s20 = smov [#allocation5]  }
  0x3c   : > { %v368_v32 = vld [vmem:[%s1275_s4] sm:$0x1]  ;;  %v721_v57 = vunpack.c.0.s8 %v720_v56  ;;  %s963_s13 = sshll.u32 %s1029_s20, 4  ;;  %s964_s13 = int_to_ptr.vmem [resolvable:$false] %s963_s13 }
  0x3d   : > { %v540_v37 = vld [vmem:[%s1279_s8] sm:$0x1]  ;;  %p961_p13 = pnand %p960_p11, %p1294_p12  ;;  %s965_s11 = scalar_lea.vmem %s964_s13, 256 }
  0x3e   : > { %v724_v58 = vsub.s32 %v721_v57, %v1204_v12  ;;  %p966_p3 = scmp.lt.s32.totalorder %s745_s27, %s964_s13  ;;  %p967_p5 = scmp.lt.s32.totalorder %s965_s11, %s959_s16 }
  0x3f   : > { %362 = vadd.xlane.f32.xlu0 %v361_v7  ;;  %p962_p1 = pneg %p961_p13 }
  0x40   : > { %p968_p8 = por %p967_p5, %p966_p3 }
  0x42   : > { %p969_p10 = pnand %p968_p8, %p962_p1 }
  0xc4   : > { %v358_v14 = vpop.xlane.xlu0 %357 }
  0xc5   : > { %v375_v15 = vrot.slane %v358_v14, %v374_v13 }
  0xc7   : > { %852 = vmatmul.mubr.msk.f32.vlgmr.msra.gmra.mxu0 %vm376_vm2, %v375_v15 }
  0xc8   : > { %v363_v17 = vpop.xlane.xlu0 %362  ;;  %860 = vmatpush3.msk.msra.mxu0 %vm353_vm0, %v537_v16  ;;  %861 = vmatprep.mubr.msk.f32.mxu0 %vm1027_vm1, %v1026_v8 }
  0xc9   : > { %v364_v18 = vmul.f32 0.00390625, %v363_v17 }
  0xcb   : > { %v545_v19 = vrot.slane %v364_v18, %v374_v13 }
  0xcd   : > { %862 = vmatmul.mubr.msk.f32.vlgmr.msra.gmra.mxu0 %vm376_vm2, %v545_v19 }
 0x187   : > { %v448_v22 = vpop.f32.mrf.mxu0 }
 0x188   : > { %v449_v23 = vadd.f32 %v448_v22, %v366_v21 }
 0x189   : > { %v853_v24 = vpop.f32.mrf.mxu0 }
 0x18a   : > { %v452_v25 = vmax.f32 %v449_v23, 0.0 }
 0x18c   : > { %857 = vmatmul.mubr.msk.f32.vlgmr.msra.gmra.mxu1 %vm453_vm4, %v452_v25 }
 0x18d   : > { %v617_v28 = vpop.f32.mrf.mxu0  ;;  %865 = vmatpush3.msk.msra.mxu1 %vm457_vm3, %v539_v26  ;;  %866 = vmatprep.mubr.msk.f32.mxu1 %vm1027_vm1, %v1026_v8 }
 0x18e   : > { %v618_v29 = vadd.f32 %v617_v28, %v538_v27 }
 0x18f   : > { %v863_v30 = vpop.f32.mrf.mxu0 }
 0x190   : > { %v621_v31 = vmax.f32 %v618_v29, 0.0 }
 0x192   : > { %867 = vmatmul.mubr.msk.f32.vlgmr.msra.gmra.mxu1 %vm453_vm4, %v621_v31 }
 0x24c   : > { %v527_v33 = vpop.f32.mrf.mxu1 }
 0x24d   : > { %v528_v34 = vadd.f32 %v527_v33, %v368_v32 }
 0x24e   : > { %v858_v35 = vpop.f32.mrf.mxu1 }
 0x24f   : > { %v827_v36 = vmul.f32 -1.442695, %v528_v34 }
 0x251   : > { %919 = vpow2.f32 %v827_v36 }
 0x252   : > { %v694_v38 = vpop.f32.mrf.mxu1 }
 0x253   : > { %v695_v39 = vadd.f32 %v694_v38, %v540_v37 }
 0x254   : > { %v868_v40 = vpop.f32.mrf.mxu1 }
 0x255   : > { %v832_v41 = vmul.f32 -1.442695, %v695_v39 }
 0x257   : > { %921 = vpow2.f32 %v832_v41 }
 0x25e   : > { %v920_v42 = vpop.eup %919 }
 0x25f   : > { %v534_v43 = vadd.f32 1.0, %v920_v42 }
 0x261   : > { %923 = vrcp.f32 %v534_v43 }
 0x264   : > { %v922_v44 = vpop.eup %921 }
 0x265   : > { %v701_v45 = vadd.f32 1.0, %v922_v44 }
 0x267   : > { %925 = vrcp.f32 %v701_v45 }
 0x26e   : > { %v924_v46 = vpop.eup %923 }
 0x274   : > { %v926_v47 = vpop.eup %925 }
 0x275   : > { %v704_v48 = vadd.f32 %v926_v47, %v924_v46 }
 0x277   : > { %v833_v49 = vmul.f32 -1.442695, %v704_v48 }
 0x279   : > { %927 = vpow2.f32 %v833_v49 }
 0x286   : > { %v928_v50 = vpop.eup %927 }
 0x287   : > { %v708_v51 = vadd.f32 1.0, %v928_v50 }
 0x289   : > { %929 = vrcp.f32 %v708_v51 }
 0x296   : > { %v930_v53 = vpop.eup %929 }
 0x297   : > { %v714_v54 = vrot.slane %v930_v53, %v713_v52 }
 0x299   : > { %716 = vbcast.lane.b32.xlu1 %v714_v54, 256 }
 0x30b   : > { %v717_v59 = vpop.permute.xlu1 %716 }
 0x30c   : > { %v725_v60 = vrot.slane %v717_v59, %v724_v58 }
 0x30e   : > { %v727_v61 = vmul.f32 %v725_v60, %v1188_v0 }
 0x310   : > { %728 = vst [vmem:[%s348_s26] sm:$0xff] %v727_v61 }
 0x311   : > { %972 = shalt.err (!%p969_p10)
}
 0x312   : > { %s973_s28 = scalar_lea.hbm %s742_s24, 128  ;;  %s977_s17 = scalar_lea.hbm %s1280_s9, 256 }
 0x313   : > { %p974_p2 = scmp.ne.s32.totalorder %s742_s24, %s973_s28  ;;  %p978_p7 = scmp.lt.s32.totalorder %s742_s24, %s1280_s9 }
 0x314   : > { %p979_p0 = scmp.lt.s32.totalorder %s977_s17, %s973_s28 }
 0x315   : > { %p975_p4 = pnand %p974_p2, %p1294_p12 }
 0x316   : > { %p980_p6 = por %p979_p0, %p978_p7 }
 0x317   : > { %p976_p9 = pneg %p975_p4 }
 0x319   : > { %p981_p11 = pnand %p980_p6, %p976_p9 }
 0x31b   : > { %984 = shalt.err (!%p981_p11)
}
 0x31c   : > { %871 = dma.vmem_to_hbm [thread:$0]  (%p1294_p12), %s745_s27, 128, %s742_s24, %s730_s25  }
 0x31d PF: > { %s756_s23 = sand.u32 1, %s1011_s30   ;;  %p1295_p13 = scmp.ne.s32.totalorder %s1289_s22, 0 }
 0x31e   : > { %p1296_p1 = scmp.ge.s32.totalorder %s1023_s12, 2  ;;  %s757_s29 = scalar_lea.sflag [#allocation4], %s756_s23 }
 0x320   : > { %p878_p3 = pnand %p1296_p1, %p1295_p13 }
 0x322   : > { %p879_p5 = pneg %p878_p3 }
 0x324   : > { %1006 = dma.done.wait (%p879_p5), %s757_s29, 128  }
 0x325   : > { %1008 = vsyncadd (%p879_p5), %s757_s29, 4294967168  ;;  %s1297_s16 = sld [smem:[#allocation8_spill]]  ;;  %p22_p8 = scmp.ge.s32.totalorder %s1105_s15, 4  }
 0x326   : > { %s1298_s11 = sld [smem:[#allocation9_spill]]  ;;  %s1299_s30 = smov %s1015_s10 }
 0x327   : > { %s1301_s12 = smov %s1105_s15  ;;  %24 = sbr.rel (!%p22_p8) target bundleno = 5 (0x5), region = 101 }
 0x32b   : > { %s1300_s10 = smov %s1297_s16 }
 0x32c   :  { %762 = vsyncpa [#allocation3], 1 }
 0x32d   :  { %764 = vsyncpa [#allocation3 + $0x1], 1 }
 0x32e   :  { %765 = vsyncpa [#allocation4], 1 }
 0x32f   :  { %767 = vsyncpa [#allocation4 + $0x1], 1 }

</bundles_post_ra>
